<compile_context>
chip_gen: v7x
topology: tpu7x:2x2x1
jax: 0.10.0
libtpu: 0.0.40
codegen_flags: <defaults>
</compile_context>

<pallas_src>
import jax
import jax.numpy as jnp
from jax import lax
from jax.experimental import pallas as pl
from jax.experimental.pallas import tpu as pltpu

# Fixed Sobel kernels from the PyTorch module (out_channels=2, in_channels=1, 3x3).
# Used by the pure-JAX reference; the Pallas kernel bakes them in as +-1/+-2
# constants in separable form.
SOBEL = jnp.array(
    [[[1.0, 2.0, 1.0], [0.0, 0.0, 0.0], [-1.0, -2.0, -1.0]],
     [[1.0, 0.0, -1.0], [2.0, 0.0, -2.0], [1.0, 0.0, -1.0]]],
    dtype=jnp.float32,
)
# nn.Conv2d(bias=True) default-initializes the bias randomly; the module never
# overwrites it.  We use a fixed deterministic bias instead (synthetic, not a
# checkpoint) so the run is reproducible.
BIAS = jnp.array([0.05, -0.05], dtype=jnp.float32)


def conv_relu_pool_kernel(b_ref, x_ref, o_ref):
    """One batch image per grid step, both output channels.

    b_ref : SMEM (2,)      conv bias
    x_ref : VMEM (H, W)    un-padded single-channel input image
    o_ref : VMEM (2, H, W) output for this batch image (both channels)
    """
    H, W = x_ref.shape
    x = x_ref[...]

    zc = jnp.zeros((H, 1), jnp.float32)   # zero column (halo fill)
    zr = jnp.zeros((1, W), jnp.float32)   # zero row    (halo fill)

    # Neighbor-value helpers with zero fill at the image border.
    def left(a):   # a(r, c-1), 0 at c == 0
        return jnp.concatenate([zc, a[:, :-1]], axis=1)

    def right(a):  # a(r, c+1), 0 at c == W-1
        return jnp.concatenate([a[:, 1:], zc], axis=1)

    def up(a):     # a(r-1, c), 0 at r == 0
        return jnp.concatenate([zr, a[:-1, :]], axis=0)

    def down(a):   # a(r+1, c), 0 at r == H-1
        return jnp.concatenate([a[1:, :], zr], axis=0)

    # --- Conv2d(1, 2, 3, padding=1), cross-correlation, separable Sobel ------
    xl = left(x)
    xr = right(x)
    A = xl + 2.0 * x + xr          # horizontal [1, 2, 1]
    B = xl - xr                    # horizontal [1, 0, -1]
    # channel 0: [[1,2,1],[0,0,0],[-1,-2,-1]]  = [1,0,-1]^T (x) [1,2,1]
    c0 = up(A) - down(A) + b_ref[0]
    # channel 1: [[1,0,-1],[2,0,-2],[1,0,-1]] = [1,2,1]^T (x) [1,0,-1]
    c1 = up(B) + 2.0 * B + down(B) + b_ref[1]

    # --- ReLU ----------------------------------------------------------------
    r0 = jnp.maximum(c0, 0.0)
    r1 = jnp.maximum(c1, 0.0)

    # --- MaxPool2d(3, stride=1, padding=1), separable (rows then columns) ----
    # PyTorch pads with -inf; post-ReLU values are >= 0, so zero fill at the
    # border is numerically identical.
    def pool3(r):
        rm = jnp.maximum(jnp.maximum(left(r), r), right(r))
        return jnp.maximum(jnp.maximum(up(rm), rm), down(rm))

    o_ref[0] = pool3(r0).astype(o_ref.dtype)
    o_ref[1] = pool3(r1).astype(o_ref.dtype)


def model_forward(x, bias=BIAS):
    """x: (N, 1, H, W) float32 NCHW -> (N, 2, H, W) float32."""
    N, C, H, W = x.shape
    assert C == 1
    x2 = x[:, 0]  # (N, H, W); halo handled in-kernel, no host-side pad.

    out = pl.pallas_call(
        conv_relu_pool_kernel,
        out_shape=jax.ShapeDtypeStruct((N, 2, H, W), jnp.float32),
        grid=(N,),
        in_specs=[
            pl.BlockSpec(memory_space=pltpu.MemorySpace.SMEM),           # bias
            pl.BlockSpec((pl.Squeezed(), H, W), lambda b: (b, 0, 0)),    # image
        ],
        out_specs=pl.BlockSpec(
            (pl.Squeezed(), 2, H, W), lambda b: (b, 0, 0, 0)
        ),
        compiler_params=pltpu.CompilerParams(
            dimension_semantics=("parallel",)   # shard batch across TCs on v7x
        ),
    )(bias, x2)
    return out


def _reference(x):
    """Pure-JAX reference of the PyTorch forward pass."""
    w = SOBEL.reshape(2, 1, 3, 3)
    conv = lax.conv_general_dilated(
        x, w, window_strides=(1, 1), padding="SAME",
        dimension_numbers=("NCHW", "OIHW", "NCHW"),
    ) + BIAS[None, :, None, None]
    relu = jnp.maximum(conv, 0.0)
    pool = lax.reduce_window(
        relu, -jnp.inf, lax.max,
        window_dimensions=(1, 1, 3, 3),
        window_strides=(1, 1, 1, 1),
        padding=((0, 0), (0, 0), (1, 1), (1, 1)),
    )
    return pool


if __name__ == "__main__":
    key = jax.random.PRNGKey(0)
    # Small grayscale "image" batch, values in [0, 1] like img_o / 255.0.
    x = jax.random.uniform(key, (2, 1, 16, 16), dtype=jnp.float32)

    y = model_forward(x)
    y = jax.block_until_ready(y)

    y_ref = _reference(x)
    assert y.shape == (2, 2, 16, 16)
    assert jnp.allclose(y, y_ref, atol=1e-5, rtol=1e-5), "mismatch vs reference"

    print("KERNEL_OK")
</pallas_src>

<mosaic_0001>
module attributes {stable_mosaic.version = 11 : i64} {
  func.func @conv_relu_pool_kernel(%arg0: i32, %arg1: memref<2xf32, #tpu.memory_space<smem>>, %arg2: memref<1x16x16xf32, #tpu.memory_space<vmem>>, %arg3: memref<1x2x16x16xf32, #tpu.memory_space<vmem>>) attributes {dimension_semantics = [#tpu.dimension_semantics<parallel>], iteration_bounds = array<i64: 2>, scalar_prefetch = 0 : i64, scratch_operands = 0 : i64, tpu.core_type = #tpu.core_type<tc>, window_params = [{transform_indices = @transform_0, window_bounds = array<i64: 2>}, {transform_indices = @transform_1, window_bounds = array<i64: 1, 16, 16>}, {transform_indices = @transform_2, window_bounds = array<i64: 1, 2, 16, 16>}]} {
    %c0 = arith.constant 0 : index
    %c0_0 = arith.constant 0 : index
    %c0_1 = arith.constant 0 : index
    %0 = vector.load %arg2[%c0, %c0_0, %c0_1] : memref<1x16x16xf32, #tpu.memory_space<vmem>>, vector<1x16x16xf32>
    %1 = vector.shape_cast %0 : vector<1x16x16xf32> to vector<16x16xf32>
    %cst = arith.constant 0.000000e+00 : f32
    %2 = vector.broadcast %cst : f32 to vector<16x1xf32>
    %cst_2 = arith.constant 0.000000e+00 : f32
    %3 = vector.broadcast %cst_2 : f32 to vector<1x16xf32>
    %4 = vector.extract_strided_slice %1 {offsets = [0, 0], sizes = [16, 15], strides = [1, 1]} : vector<16x16xf32> to vector<16x15xf32>
    %5 = tpu.concatenate %2, %4 in 1 : vector<16x1xf32>, vector<16x15xf32> -> vector<16x16xf32>
    %6 = vector.extract_strided_slice %1 {offsets = [0, 1], sizes = [16, 15], strides = [1, 1]} : vector<16x16xf32> to vector<16x15xf32>
    %7 = tpu.concatenate %6, %2 in 1 : vector<16x15xf32>, vector<16x1xf32> -> vector<16x16xf32>
    %cst_3 = arith.constant 2.000000e+00 : f32
    %8 = vector.broadcast %cst_3 : f32 to vector<16x16xf32>
    %9 = arith.mulf %8, %1 : vector<16x16xf32>
    %10 = arith.addf %5, %9 : vector<16x16xf32>
    %11 = arith.addf %10, %7 : vector<16x16xf32>
    %12 = arith.subf %5, %7 : vector<16x16xf32>
    %13 = vector.extract_strided_slice %11 {offsets = [0, 0], sizes = [15, 16], strides = [1, 1]} : vector<16x16xf32> to vector<15x16xf32>
    %14 = tpu.concatenate %3, %13 in 0 : vector<1x16xf32>, vector<15x16xf32> -> vector<16x16xf32>
    %15 = vector.extract_strided_slice %11 {offsets = [1, 0], sizes = [15, 16], strides = [1, 1]} : vector<16x16xf32> to vector<15x16xf32>
    %16 = tpu.concatenate %15, %3 in 0 : vector<15x16xf32>, vector<1x16xf32> -> vector<16x16xf32>
    %17 = arith.subf %14, %16 : vector<16x16xf32>
    %c0_4 = arith.constant 0 : index
    %18 = memref.load %arg1[%c0_4] : memref<2xf32, #tpu.memory_space<smem>>
    %19 = vector.broadcast %18 : f32 to vector<16x16xf32>
    %20 = arith.addf %17, %19 : vector<16x16xf32>
    %21 = vector.extract_strided_slice %12 {offsets = [0, 0], sizes = [15, 16], strides = [1, 1]} : vector<16x16xf32> to vector<15x16xf32>
    %22 = tpu.concatenate %3, %21 in 0 : vector<1x16xf32>, vector<15x16xf32> -> vector<16x16xf32>
    %cst_5 = arith.constant 2.000000e+00 : f32
    %23 = vector.broadcast %cst_5 : f32 to vector<16x16xf32>
    %24 = arith.mulf %23, %12 : vector<16x16xf32>
    %25 = arith.addf %22, %24 : vector<16x16xf32>
    %26 = vector.extract_strided_slice %12 {offsets = [1, 0], sizes = [15, 16], strides = [1, 1]} : vector<16x16xf32> to vector<15x16xf32>
    %27 = tpu.concatenate %26, %3 in 0 : vector<15x16xf32>, vector<1x16xf32> -> vector<16x16xf32>
    %28 = arith.addf %25, %27 : vector<16x16xf32>
    %c1 = arith.constant 1 : index
    %29 = memref.load %arg1[%c1] : memref<2xf32, #tpu.memory_space<smem>>
    %30 = vector.broadcast %29 : f32 to vector<16x16xf32>
    %31 = arith.addf %28, %30 : vector<16x16xf32>
    %cst_6 = arith.constant 0.000000e+00 : f32
    %32 = vector.broadcast %cst_6 : f32 to vector<16x16xf32>
    %33 = arith.maximumf %20, %32 : vector<16x16xf32>
    %cst_7 = arith.constant 0.000000e+00 : f32
    %34 = vector.broadcast %cst_7 : f32 to vector<16x16xf32>
    %35 = arith.maximumf %31, %34 : vector<16x16xf32>
    %36 = vector.extract_strided_slice %33 {offsets = [0, 0], sizes = [16, 15], strides = [1, 1]} : vector<16x16xf32> to vector<16x15xf32>
    %37 = tpu.concatenate %2, %36 in 1 : vector<16x1xf32>, vector<16x15xf32> -> vector<16x16xf32>
    %38 = arith.maximumf %37, %33 : vector<16x16xf32>
    %39 = vector.extract_strided_slice %33 {offsets = [0, 1], sizes = [16, 15], strides = [1, 1]} : vector<16x16xf32> to vector<16x15xf32>
    %40 = tpu.concatenate %39, %2 in 1 : vector<16x15xf32>, vector<16x1xf32> -> vector<16x16xf32>
    %41 = arith.maximumf %38, %40 : vector<16x16xf32>
    %42 = vector.extract_strided_slice %41 {offsets = [0, 0], sizes = [15, 16], strides = [1, 1]} : vector<16x16xf32> to vector<15x16xf32>
    %43 = tpu.concatenate %3, %42 in 0 : vector<1x16xf32>, vector<15x16xf32> -> vector<16x16xf32>
    %44 = arith.maximumf %43, %41 : vector<16x16xf32>
    %45 = vector.extract_strided_slice %41 {offsets = [1, 0], sizes = [15, 16], strides = [1, 1]} : vector<16x16xf32> to vector<15x16xf32>
    %46 = tpu.concatenate %45, %3 in 0 : vector<15x16xf32>, vector<1x16xf32> -> vector<16x16xf32>
    %47 = arith.maximumf %44, %46 : vector<16x16xf32>
    %c0_8 = arith.constant 0 : index
    %c0_9 = arith.constant 0 : index
    %c0_10 = arith.constant 0 : index
    %c0_11 = arith.constant 0 : index
    %48 = vector.load %arg3[%c0_8, %c0_9, %c0_10, %c0_11] : memref<1x2x16x16xf32, #tpu.memory_space<vmem>>, vector<1x1x16x16xf32>
    %49 = vector.shape_cast %48 : vector<1x1x16x16xf32> to vector<16x16xf32>
    %50 = vector.shape_cast %47 : vector<16x16xf32> to vector<1x1x16x16xf32>
    tpu.vector_store %arg3[%c0_8, %c0_9, %c0_10, %c0_11], %50 {strides = array<i32>} : memref<1x2x16x16xf32, #tpu.memory_space<vmem>>, vector<1x1x16x16xf32>,
    %51 = vector.extract_strided_slice %35 {offsets = [0, 0], sizes = [16, 15], strides = [1, 1]} : vector<16x16xf32> to vector<16x15xf32>
    %52 = tpu.concatenate %2, %51 in 1 : vector<16x1xf32>, vector<16x15xf32> -> vector<16x16xf32>
    %53 = arith.maximumf %52, %35 : vector<16x16xf32>
    %54 = vector.extract_strided_slice %35 {offsets = [0, 1], sizes = [16, 15], strides = [1, 1]} : vector<16x16xf32> to vector<16x15xf32>
    %55 = tpu.concatenate %54, %2 in 1 : vector<16x15xf32>, vector<16x1xf32> -> vector<16x16xf32>
    %56 = arith.maximumf %53, %55 : vector<16x16xf32>
    %57 = vector.extract_strided_slice %56 {offsets = [0, 0], sizes = [15, 16], strides = [1, 1]} : vector<16x16xf32> to vector<15x16xf32>
    %58 = tpu.concatenate %3, %57 in 0 : vector<1x16xf32>, vector<15x16xf32> -> vector<16x16xf32>
    %59 = arith.maximumf %58, %56 : vector<16x16xf32>
    %60 = vector.extract_strided_slice %56 {offsets = [1, 0], sizes = [15, 16], strides = [1, 1]} : vector<16x16xf32> to vector<15x16xf32>
    %61 = tpu.concatenate %60, %3 in 0 : vector<15x16xf32>, vector<1x16xf32> -> vector<16x16xf32>
    %62 = arith.maximumf %59, %61 : vector<16x16xf32>
    %c0_12 = arith.constant 0 : index
    %c1_13 = arith.constant 1 : index
    %c0_14 = arith.constant 0 : index
    %c0_15 = arith.constant 0 : index
    %63 = vector.load %arg3[%c0_12, %c1_13, %c0_14, %c0_15] : memref<1x2x16x16xf32, #tpu.memory_space<vmem>>, vector<1x1x16x16xf32>
    %64 = vector.shape_cast %63 : vector<1x1x16x16xf32> to vector<16x16xf32>
    %65 = vector.shape_cast %62 : vector<16x16xf32> to vector<1x1x16x16xf32>
    tpu.vector_store %arg3[%c0_12, %c1_13, %c0_14, %c0_15], %65 {strides = array<i32>} : memref<1x2x16x16xf32, #tpu.memory_space<vmem>>, vector<1x1x16x16xf32>,
    return
  }
  func.func @transform_0(%arg0: i32) -> i32 {
    %c0_i32 = arith.constant 0 : i32
    %c0_i32_0 = arith.constant 0 : i32
    return %c0_i32 : i32
  }
  func.func @transform_1(%arg0: i32) -> (i32, i32, i32) {
    %c0_i32 = arith.constant 0 : i32
    %c0_i32_0 = arith.constant 0 : i32
    %c0_i32_1 = arith.constant 0 : i32
    return %arg0, %c0_i32, %c0_i32_0 : i32, i32, i32
  }
  func.func @transform_2(%arg0: i32) -> (i32, i32, i32, i32) {
    %c0_i32 = arith.constant 0 : i32
    %c0_i32_0 = arith.constant 0 : i32
    %c0_i32_1 = arith.constant 0 : i32
    %c0_i32_2 = arith.constant 0 : i32
    return %arg0, %c0_i32, %c0_i32_0, %c0_i32_1 : i32, i32, i32, i32
  }
}

</mosaic_0001>

<bundles_post_ra>
// kernel: tpu_custom_call.1
= control target key start
LH: loop header
LB: loop body
LE: loop exit
PB: predicated region body
PF: predicated region fallthrough
CT: control target
= control target key end

     0   :  { %7 = vsyncpa [#allocation5], 0  ;;  %s903_s0 = inlined_call_operand.hbm [shape: f32[2], index: 0, kind: input, shape index: {}]   ;;  %s904_s1 = inlined_call_operand.hbm [shape: f32[2,16,16], index: 1, kind: input, shape index: {}]   ;;  %s905_s2 = inlined_call_operand.hbm [shape: f32[2,2,16,16], index: 2, kind: output, shape index: {}]  }
   0x1   :  { %8 = vsyncpa [#allocation3], 0 }
   0x2   :  { %10 = vsyncpa [#allocation3 + $0x1], 0 }
   0x3   :  { %11 = vsyncpa [#allocation4], 0 }
   0x4   :  { %13 = vsyncpa [#allocation4 + $0x1], 0  ;;  %s662_s9 = smov 0   ;;  %s664_s10 = smov 0  }
   0x5   :  { %s666_s11 = smov 0   ;;  %s668_s12 = smov 0  }
   0x6 LB: > { %s683_s13 = sadd.s32 4294967295, %s636_s12   ;;  %s439_s14 = sadd.s32 4294967294, %s636_s12   ;;  %s636_s12 = sphi %s668_s12, %s925_s12   ;;  %s632_s11 = sphi %s666_s11, %s924_s11   ;;  %s628_s10 = sphi %s664_s10, %s923_s10   ;;  %s624_s9 = sphi %s662_s9, %s922_s9  }
   0x7   : > { %s687_s15 = sadd.s32 1, %s636_s12   ;;  %s47_s16 = sadd.s32 1, %s632_s11 }
   0x8   : > { %s44_s17 = ssub.s32 %s636_s12, %s687_s15  ;;  %p54_p0 = scmp.ne.s32.totalorder %s632_s11, %s628_s10 }
   0x9   : > { %p45_p1 = scmp.eq.s32.totalorder %s44_s17, 0  ;;  %p55_p2 = scmp.eq.s32.totalorder %s636_s12, 0 }
   0xa   : > { %p60_p3 = scmp.ne.s32.totalorder %s628_s10, %s624_s9  ;;  %p906_p4 = scmp.eq.s32.totalorder %s683_s13, 0 }
   0xb   : > { %s699_s18 = scalar_select %p45_p1, %s632_s11, %s47_s16  }
   0xc   : > { %p701_p5 = por %p55_p2, %p54_p0  ;;  %p707_p6 = por %p906_p4, %p60_p3 }
   0xd   : > { %p84_p7 = scmp.eq.s32.totalorder %s683_s13, 1  ;;  %p90_p8 = scmp.eq.s32.totalorder %s439_s14, 1 }
   0xe   : > { %s910_s20 = scalar_select %p707_p6, 1, 0 }
   0xf   : > { %p440_p9 = scmp.ge.s32.totalorder %s636_s12, 1  ;;  %p97_p10 = scmp.lt.s32.totalorder %s636_s12, 3 }
  0x10   : > { %p714_p11 = por %p84_p7, %p54_p0  ;;  %p718_p12 = por %p90_p8, %p60_p3 }
  0x11   : > { %p722_p13 = pnand %p440_p9, %p97_p10  ;;  %p481_p4 = scmp.lt.s32.totalorder %s636_s12, 2 }
  0x12   : > { %s911_s21 = scalar_select %p714_p11, 1, 0 }
  0x13   : > { %s912_s22 = scalar_select %p718_p12, 1, 0 }
  0x14   : > { %p468_p2 = pneg %p722_p13  ;;  %s119_s24 = sand.u32 1, %s632_s11  }
  0x15   : > { %s458_s25 = sshll.u32 %s636_s12, 8  ;;  %p914_p6 = scmp.eq.s32.totalorder %s683_s13, 0 }
  0x16   : > { %p736_p7 = pnand %p481_p4, %p701_p5  ;;  %s443_s27 = sshll.u32 %s119_s24, 4 }
  0x17   : > { %p469_p0 = pnand %p468_p2, %p914_p6  ;;  %s523_s30 = scalar_lea.hbm %s903_s0, 16 }
  0x18   : > { %p524_p3 = scmp.ne.s32.totalorder %s903_s0, %s523_s30  ;;  %p530_p6 = scmp.lt.u32.totalorder %s523_s30, %s903_s0 }
  0x19   : > { %p525_p8 = pneg %p469_p0 }
  0x1b   : > { %p526_p9 = pnand %p525_p8, %p524_p3 }
  0x1d   : > { %p527_p10 = pneg %p526_p9 }
  0x1f   : > { %p532_p4 = pnand %p530_p6, %p527_p10 }
  0x21   : > { %535 = shalt.err (!%p532_p4)
}
  0x22   : > { %s638_s7 = smov [#allocation2]   ;;  %s755_s19 = scalar_lea.hbm %s904_s1, %s458_s25 }
  0x23   : > { %471 = dma.hbm_to_smem (!%p469_p0), %s903_s0, 16, %s638_s7, [#allocation5]  }
  0x24   : > { %s123_s28 = scalar_lea.vmem [#allocation6], %s443_s27  ;;  %s759_s30 = scalar_lea.sflag [#allocation3], %s119_s24 }
  0x25   : > { %s130_s29 = sshll.u32 %s123_s28, 4  ;;  %s536_s3 = scalar_lea.hbm %s755_s19, 256  ;;  %s757_s29 = int_to_ptr.vmem [resolvable:$true] %s130_s29 }
  0x26   : > { %p537_p5 = scmp.ne.s32.totalorder %s755_s19, %s536_s3  ;;  %p538_p2 = pneg %p736_p7 }
  0x27   : > { %s541_s5 = scalar_lea.hbm %s904_s1, 512  ;;  %p542_p8 = scmp.lt.u32.totalorder %s755_s19, %s904_s1 }
  0x28   : > { %p539_p0 = pnand %p538_p2, %p537_p5  ;;  %p543_p9 = scmp.lt.u32.totalorder %s541_s5, %s536_s3 }
  0x29   : > { %p545_p6 = scmp.lt.u32.totalorder %s536_s3, %s755_s19 }
  0x2a   : > { %p540_p3 = pneg %p539_p0  ;;  %p544_p10 = por %p543_p9, %p542_p8 }
  0x2c   : > { %p546_p4 = por %p545_p6, %p544_p10 }
  0x2e   : > { %p547_p1 = pnand %p546_p4, %p540_p3 }
  0x30   : > { %550 = shalt.err (!%p547_p1)
}
  0x31   : > { %s551_s24 = scalar_lea.vmem %s757_s29, 256  ;;  %s639_s27 = smov [#allocation6]  }
  0x32   : > { %p552_p5 = scmp.ne.s32.totalorder %s757_s29, %s551_s24  ;;  %s556_s8 = sshll.u32 %s639_s27, 4  ;;  %s557_s8 = int_to_ptr.vmem [resolvable:$false] %s556_s8 }
  0x33   : > { %s558_s14 = scalar_lea.vmem %s557_s8, 512  ;;  %p559_p11 = scmp.lt.s32.totalorder %s757_s29, %s557_s8 }
  0x34   : > { %p554_p0 = pnand %p552_p5, %p538_p2  ;;  %p560_p8 = scmp.lt.s32.totalorder %s558_s14, %s551_s24 }
  0x36   : > { %p555_p12 = pneg %p554_p0  ;;  %p561_p9 = por %p560_p8, %p559_p11 }
  0x38   : > { %p562_p10 = pnand %p561_p9, %p555_p12 }
  0x3a   : > { %565 = shalt.err (!%p562_p10)
}
  0x3b   : > { %s640_s16 = smov 128   ;;  %s641_s17 = smov 8  }
  0x3c   : > { %475 = dma.hbm_to_vmem [thread:$0]  (!%p736_p7), %s755_s19, 256, %s757_s29, %s759_s30, %s640_s16, %s640_s16, %s641_s17  }
  0x3d   : > { %142 = sbr.rel (%p722_p13) target bundleno = 361 (0x169), region = 28  ;;  %p916_p1 = scmp.eq.s32.totalorder (!%p722_p13), %s683_s13, 0 }
  0x44   : > { %611 = dma.done.wait (%p916_p1), [#allocation5], 16   ;;  %p917_p2 = pmov %p916_p1 }
  0x45   : > { %s794_s28 = sand.u32 1, %s628_s10   ;;  %p918_p11 = scmp.ne.s32.totalorder %s910_s20, 0 }
  0x46   : > { %613 = vsyncadd (%p917_p2), [#allocation5], 4294967280  ;;  %s448_s3 = sshll.u32 %s794_s28, 4  ;;  %s149_s25 = scalar_lea.sflag [#allocation3], %s794_s28 }
  0x47   : > { %s152_s4 = scalar_lea.vmem [#allocation6], %s448_s3 }
  0x48   : > { %615 = dma.done.wait (%p918_p11), %s149_s25, 256  }
  0x49   : > { %617 = vsyncadd (%p918_p11), %s149_s25, 4294967040 }
  0x4a   : > { %157 = sfence }
  0x4b   : > { %v174_v0 = vld [vmem:[%s152_s4] sm:$0xff]  ;;  %s642_s23 = smov 127   ;;  %s643_s26 = smov 1   ;;  %v175_v1 = vld [vmem:[%s152_s4 + $0x8] sm:$0xff]  ;;  %vm193_vm0 = vcmask 121856   ;;  %vm184_vm1 = vcmask 7168  }
  0x4c   : > { %187 = vrot.lane.b32.xlu1 %v174_v0, %s642_s23  ;;  %178 = vrot.lane.b32.xlu0 %v174_v0, %s643_s26  ;;  %v196_v2 = vmul.f32 2.0, %v174_v0  ;;  %v197_v9 = vmul.f32 2.0, %v175_v1  ;;  %s808_s20 = sld [smem:[#allocation2]]  ;;  %vm206_vm2 = vcmask 1040384   ;;  %s812_s19 = sld [smem:[#allocation2 + $0x1]]  ;;  %vm213_vm3 = vcmask 1046528  }
  0x4d   : > { %s449_s29 = sshll.u32 %s794_s28, 5  ;;  %vm294_vm4 = vcmask 130048   ;;  %s459_s5 = sshll.u32 %s683_s13, 9 }
  0x4e   : > { %s173_s30 = scalar_lea.vmem [#allocation7], %s449_s29  ;;  %s855_s27 = scalar_lea.hbm %s905_s2, %s459_s5 }
  0x4f   : > { %s354_s6 = sshll.u32 %s173_s30, 4  ;;  %s341_s13 = scalar_lea.sflag [#allocation4], %s794_s28  ;;  %s857_s6 = int_to_ptr.vmem [resolvable:$true] %s354_s6 }
  0x50   : > { %189 = vrot.lane.b32.xlu1 %v175_v1, %s642_s23  ;;  %180 = vrot.lane.b32.xlu0 %v175_v1, %s643_s26  ;;  %s566_s8 = scalar_lea.vmem %s857_s6, 512  ;;  %p919_p13 = scmp.ne.s32.totalorder %s911_s21, 0 }
  0x51   : > { %p567_p12 = scmp.ne.s32.totalorder %s857_s6, %s566_s8  ;;  %s644_s14 = smov [#allocation7]  }
  0x52   : > { %v223_v29 = vstv %s808_s20  ;;  %v247_v42 = vstv %s812_s19  ;;  %s570_s16 = sshll.u32 %s644_s14, 4  ;;  %s571_s16 = int_to_ptr.vmem [resolvable:$false] %s570_s16 }
  0x53   : > { %p568_p7 = pnand %p567_p12, %p919_p13  ;;  %s572_s17 = scalar_lea.vmem %s571_s16, 1024 }
  0x54   : > { %p573_p6 = scmp.lt.s32.totalorder %s857_s6, %s571_s16  ;;  %p574_p4 = scmp.lt.s32.totalorder %s572_s17, %s566_s8 }
  0x55   : > { %p569_p3 = pneg %p568_p7 }
  0x56   : > { %p575_p5 = por %p574_p4, %p573_p6 }
  0x58   : > { %p576_p0 = pnand %p575_p5, %p569_p3 }
  0xbe   : > { %v188_v3 = vpop.permute.xlu1 %187  ;;  %v179_v4 = vpop.permute.xlu0 %178 }
  0xbf   : > { %v194_v5 = vsel %vm193_vm0, %v188_v3, 0.0  ;;  %v185_v6 = vsel %vm184_vm1, 0.0, %v179_v4 }
  0xc0   : > { %v198_v7 = vadd.f32 %v196_v2, %v185_v6  ;;  %v202_v8 = vsub.f32 %v185_v6, %v194_v5 }
  0xc2   : > { %v200_v10 = vadd.f32 %v198_v7, %v194_v5  ;;  %v228_v11 = vrot.slane %v202_v8, 7  ;;  %v190_v12 = vpop.permute.xlu1 %189  ;;  %v181_v13 = vpop.permute.xlu0 %180  ;;  %v234_v18 = vmul.f32 2.0, %v202_v8  ;;  %v238_v22 = vrot.slane %v202_v8, 1 }
  0xc3   : > { %v195_v14 = vsel %vm193_vm0, %v190_v12, 0.0  ;;  %v186_v15 = vsel %vm184_vm1, 0.0, %v181_v13 }
  0xc4   : > { %v199_v16 = vadd.f32 %v197_v9, %v186_v15  ;;  %v207_v17 = vrot.slane %v200_v10, 7  ;;  %v203_v19 = vsub.f32 %v186_v15, %v195_v14  ;;  %v233_v20 = vsel %vm206_vm2, 0.0, %v228_v11 }
  0xc5   : > { %v214_v26 = vrot.slane %v200_v10, 1  ;;  %v236_v30 = vadd.f32 %v234_v18, %v233_v20 }
  0xc6   : > { %v201_v21 = vadd.f32 %v199_v16, %v195_v14  ;;  %v229_v23 = vrot.slane %v203_v19, 7  ;;  %v235_v24 = vmul.f32 2.0, %v203_v19  ;;  %v239_v25 = vrot.slane %v203_v19, 1 }
  0xc7   : > { %v212_v32 = vsel %vm206_vm2, 0.0, %v207_v17 }
  0xc8   : > { %v208_v27 = vrot.slane %v201_v21, 7  ;;  %v215_v28 = vrot.slane %v201_v21, 1  ;;  %v230_v31 = vsel %vm206_vm2, %v228_v11, %v229_v23  ;;  %v240_v33 = vsel %vm213_vm3, %v238_v22, %v239_v25 }
  0xc9   : > { %v237_v34 = vadd.f32 %v235_v24, %v230_v31  ;;  %v244_v40 = vadd.f32 %v240_v33, %v236_v30  ;;  %v243_v41 = vsel %vm213_vm3, %v239_v25, 0.0 }
  0xca   : > { %v216_v35 = vsel %vm213_vm3, %v214_v26, %v215_v28  ;;  %v209_v36 = vsel %vm206_vm2, %v207_v17, %v208_v27  ;;  %v219_v37 = vsel %vm213_vm3, %v215_v28, 0.0 }
  0xcb   : > { %v220_v38 = vsub.f32 %v212_v32, %v216_v35  ;;  %v221_v39 = vsub.f32 %v209_v36, %v219_v37  ;;  %v245_v43 = vadd.f32 %v243_v41, %v237_v34  ;;  %v248_v48 = vadd.f32 %v247_v42, %v244_v40 }
  0xcd   : > { %v224_v44 = vadd.f32 %v223_v29, %v220_v38  ;;  %v225_v45 = vadd.f32 %v223_v29, %v221_v39  ;;  %v249_v49 = vadd.f32 %v247_v42, %v245_v43  ;;  %v252_v50 = vmax.f32 %v248_v48, 0.0 }
  0xcf   : > { %v250_v46 = vmax.f32 %v224_v44, 0.0  ;;  %v251_v47 = vmax.f32 %v225_v45, 0.0  ;;  %v253_v51 = vmax.f32 %v249_v49, 0.0 }
  0xd1   : > { %256 = vrot.lane.b32.xlu0 %v250_v46, %s643_s26  ;;  %258 = vrot.lane.b32.xlu1 %v251_v47, %s643_s26 }
  0xd5   : > { %299 = vrot.lane.b32.xlu0 %v252_v50, %s643_s26  ;;  %301 = vrot.lane.b32.xlu1 %v253_v51, %s643_s26 }
  0xd9   : > { %266 = vrot.lane.b32.xlu0 %v250_v46, %s642_s23  ;;  %268 = vrot.lane.b32.xlu1 %v251_v47, %s642_s23 }
  0xdd   : > { %309 = vrot.lane.b32.xlu0 %v252_v50, %s642_s23  ;;  %311 = vrot.lane.b32.xlu1 %v253_v51, %s642_s23 }
 0x143   : > { %v257_v52 = vpop.permute.xlu0 %256  ;;  %v259_v53 = vpop.permute.xlu1 %258 }
 0x144   : > { %v262_v56 = vsel %vm184_vm1, 0.0, %v257_v52  ;;  %v263_v57 = vsel %vm184_vm1, 0.0, %v259_v53 }
 0x145   : > { %v264_v58 = vmax.f32 %v262_v56, %v250_v46  ;;  %v265_v59 = vmax.f32 %v263_v57, %v251_v47 }
 0x147   : > { %v300_v54 = vpop.permute.xlu0 %299  ;;  %v302_v55 = vpop.permute.xlu1 %301 }
 0x148   : > { %v305_v0 = vsel %vm184_vm1, 0.0, %v300_v54  ;;  %v306_v1 = vsel %vm184_vm1, 0.0, %v302_v55 }
 0x149   : > { %v307_v10 = vmax.f32 %v305_v0, %v252_v50  ;;  %v308_v11 = vmax.f32 %v306_v1, %v253_v51 }
 0x14b   : > { %v267_v60 = vpop.permute.xlu0 %266  ;;  %v269_v61 = vpop.permute.xlu1 %268 }
 0x14c   : > { %v272_v62 = vsel %vm193_vm0, %v267_v60, 0.0  ;;  %v273_v63 = vsel %vm193_vm0, %v269_v61, 0.0 }
 0x14d   : > { %v274_v2 = vmax.f32 %v264_v58, %v272_v62  ;;  %v275_v3 = vmax.f32 %v265_v59, %v273_v63 }
 0x14f   : > { %v278_v4 = vrot.slane %v274_v2, 7  ;;  %v286_v5 = vrot.slane %v274_v2, 1  ;;  %v279_v6 = vrot.slane %v275_v3, 7  ;;  %v287_v7 = vrot.slane %v275_v3, 1  ;;  %v310_v8 = vpop.permute.xlu0 %309  ;;  %v312_v9 = vpop.permute.xlu1 %311 }
 0x150   : > { %v315_v12 = vsel %vm193_vm0, %v310_v8, 0.0  ;;  %v316_v13 = vsel %vm193_vm0, %v312_v9, 0.0 }
 0x151   : > { %v283_v14 = vsel %vm206_vm2, 0.0, %v278_v4  ;;  %v280_v15 = vsel %vm206_vm2, %v278_v4, %v279_v6  ;;  %v317_v18 = vmax.f32 %v307_v10, %v315_v12  ;;  %v318_v19 = vmax.f32 %v308_v11, %v316_v13 }
 0x152   : > { %v284_v16 = vmax.f32 %v283_v14, %v274_v2  ;;  %v285_v17 = vmax.f32 %v280_v15, %v275_v3  ;;  %v288_v20 = vsel %vm213_vm3, %v286_v5, %v287_v7  ;;  %v291_v21 = vsel %vm213_vm3, %v287_v7, 0.0 }
 0x153   : > { %v321_v24 = vrot.slane %v317_v18, 7  ;;  %v329_v25 = vrot.slane %v317_v18, 1  ;;  %v322_v26 = vrot.slane %v318_v19, 7  ;;  %v330_v27 = vrot.slane %v318_v19, 1 }
 0x154   : > { %v292_v22 = vmax.f32 %v284_v16, %v288_v20  ;;  %v293_v23 = vmax.f32 %v285_v17, %v291_v21 }
 0x155   : > { %v326_v28 = vsel %vm206_vm2, 0.0, %v321_v24  ;;  %v323_v30 = vsel %vm206_vm2, %v321_v24, %v322_v26  ;;  %v331_v32 = vsel %vm213_vm3, %v329_v25, %v330_v27  ;;  %v334_v33 = vsel %vm213_vm3, %v330_v27, 0.0 }
 0x156   : > { %295 = vst.msk [vmem:[%s173_s30] sm:$0xff] %vm294_vm4, %v292_v22  ;;  %296 = vst.msk [vmem:[%s173_s30 + $0x8] sm:$0xff] %vm294_vm4, %v293_v23  ;;  %v327_v29 = vmax.f32 %v326_v28, %v317_v18  ;;  %v328_v31 = vmax.f32 %v323_v30, %v318_v19 }
 0x158   : > { %v335_v34 = vmax.f32 %v327_v29, %v331_v32  ;;  %v336_v35 = vmax.f32 %v328_v31, %v334_v33 }
 0x15a   : > { %451 = vst.msk [vmem:[%s173_s30 + $0x10] sm:$0xff] %vm294_vm4, %v335_v34  ;;  %452 = vst.msk [vmem:[%s173_s30 + $0x18] sm:$0xff] %vm294_vm4, %v336_v35 }
 0x15b   : > { %579 = shalt.err (!%p576_p0)
}
 0x15c   : > { %s580_s3 = scalar_lea.hbm %s855_s27, 512  ;;  %s584_s23 = scalar_lea.hbm %s905_s2, 1024 }
 0x15d   : > { %p581_p8 = scmp.ne.s32.totalorder %s855_s27, %s580_s3  ;;  %p585_p1 = scmp.lt.u32.totalorder %s855_s27, %s905_s2 }
 0x15e   : > { %p586_p2 = scmp.lt.u32.totalorder %s584_s23, %s580_s3  ;;  %p588_p12 = scmp.lt.u32.totalorder %s580_s3, %s855_s27 }
 0x15f   : > { %p582_p9 = pnand %p581_p8, %p919_p13 }
 0x160   : > { %p587_p11 = por %p586_p2, %p585_p1 }
 0x161   : > { %p583_p10 = pneg %p582_p9 }
 0x162   : > { %p589_p7 = por %p588_p12, %p587_p11 }
 0x164   : > { %p590_p3 = pnand %p589_p7, %p583_p10 }
 0x166   : > { %593 = shalt.err (!%p590_p3)
}
 0x167   : > { %s645_s19 = smov 128   ;;  %s646_s29 = smov 8  }
 0x168   : > { %466 = dma.vmem_to_hbm [thread:$0]  (%p919_p13), %s857_s6, 512, %s855_s27, %s341_s13, %s645_s19, %s645_s19, %s646_s29  }
 0x169 PF: > { %s369_s30 = sand.u32 1, %s624_s9   ;;  %p920_p6 = scmp.ne.s32.totalorder %s912_s22, 0 }
 0x16a   : > { %p921_p4 = scmp.ge.s32.totalorder %s636_s12, 2  ;;  %s370_s5 = scalar_lea.sflag [#allocation4], %s369_s30 }
 0x16c   : > { %p477_p5 = pnand %p921_p4, %p920_p6 }
 0x16e   : > { %619 = dma.done.wait (!%p477_p5), %s370_s5, 512  }
 0x16f   : > { %621 = vsyncadd (!%p477_p5), %s370_s5, 4294966784  ;;  %p16_p0 = scmp.ge.s32.totalorder %s687_s15, 4   ;;  %s922_s9 = smov %s628_s10 }
 0x170   : > { %s923_s10 = smov %s632_s11  ;;  %s924_s11 = smov %s699_s18 }
 0x171   : > { %s925_s12 = smov %s687_s15  ;;  %18 = sbr.rel (!%p16_p0) target bundleno = 6 (0x6), region = 79 }
 0x178   :  { %375 = vsyncpa [#allocation3], 1 }
 0x179   :  { %377 = vsyncpa [#allocation3 + $0x1], 1 }
 0x17a   :  { %378 = vsyncpa [#allocation4], 1 }
 0x17b   :  { %380 = vsyncpa [#allocation4 + $0x1], 1 }
 0x17c   :  { %381 = vsyncpa [#allocation5], 1 }
 0x17d   :  { %383 = vsyncpa [#allocation5 + $0x1], 1 }

</bundles_post_ra>
